<compile_context>
chip_gen: v5e
topology: v5e:2x2
jax: 0.10.0
libtpu: 0.0.40
codegen_flags: <defaults>
</compile_context>

<pallas_src>
import jax
import jax.numpy as jnp
from jax.experimental import pallas as pl
from jax.experimental.pallas import tpu as pltpu

INPUT_SIZE = 3
HIDDEN_SIZE = 2
LANE = 128        # TPU lane width
MAX_TB = 1024     # batch-tile cap (multiple of 128); tiny vs. any VMEM budget


def mlp_kernel(w1_ref, b1_ref, w2_ref, b2_ref, x_ref, o_ref):
    """x_ref: (INPUT_SIZE, TB) in VMEM, o_ref: (1, TB) in VMEM, params in SMEM."""
    x = x_ref[...]                                     # (INPUT_SIZE, TB) f32
    tb = x.shape[-1]
    # z = b2 + sum_j w2[j] * relu(b1[j] + sum_k w1[k, j] * x[k, :])
    z = jnp.full((1, tb), b2_ref[0], dtype=jnp.float32)
    for j in range(HIDDEN_SIZE):                       # fully unrolled (2)
        h = jnp.full((1, tb), b1_ref[j], dtype=jnp.float32)
        for k in range(INPUT_SIZE):                    # fully unrolled (3)
            h = h + w1_ref[k, j] * x[k:k + 1, :]       # scalar * lane-vector FMA (VPU)
        h = jnp.maximum(h, 0.0)                        # ReLU
        z = z + w2_ref[j] * h
    # Sigmoid via EUP exp + approximate reciprocal; one Newton refinement
    # step keeps full f32 accuracy (<= ~1e-7 error vs jax.nn.sigmoid).
    d = 1.0 + jnp.exp(-z)
    r = pl.reciprocal(d, approx=True)
    o_ref[...] = r * (2.0 - d * r)


def _round_up(n, m):
    return ((n + m - 1) // m) * m


def neural_net_forward(x, w1, b1, w2, b2):
    """x: (B, INPUT_SIZE) f32; w1: (in, hidden) = linear1.weight.T; b1: (hidden,);
    w2: (hidden,) = linear2.weight.T squeezed; b2: (1,).  Returns (B, 1) f32,
    matching the PyTorch module's output layout."""
    B = x.shape[0]
    TB = min(MAX_TB, _round_up(B, LANE))       # lane-dense batch tile
    B_pad = _round_up(B, TB)

    # Layout plumbing (wrapper-side): batch onto the lane axis, pad to full tiles.
    xT = jnp.pad(jnp.asarray(x, jnp.float32).T, ((0, 0), (0, B_pad - B)))

    smem = pl.BlockSpec(memory_space=pltpu.MemorySpace.SMEM)
    out = pl.pallas_call(
        mlp_kernel,
        out_shape=jax.ShapeDtypeStruct((1, B_pad), jnp.float32),
        grid=(B_pad // TB,),
        in_specs=[smem, smem, smem, smem,
                  pl.BlockSpec((INPUT_SIZE, TB), lambda i: (0, i))],
        out_specs=pl.BlockSpec((1, TB), lambda i: (0, i)),
        compiler_params=pltpu.CompilerParams(
            dimension_semantics=("parallel",)),
    )(jnp.asarray(w1, jnp.float32),
      jnp.asarray(b1, jnp.float32).reshape(HIDDEN_SIZE),
      jnp.asarray(w2, jnp.float32).reshape(HIDDEN_SIZE),
      jnp.asarray(b2, jnp.float32).reshape(1),
      xT)
    return out[0, :B].reshape(B, 1)


def reference_forward(x, w1, b1, w2, b2):
    h = jnp.maximum(x @ w1 + b1[None, :], 0.0)
    return jax.nn.sigmoid(h @ w2[:, None] + b2[None, :])


if __name__ == "__main__":
    key = jax.random.PRNGKey(0)
    kx, k1, k2, k3, k4, kx2 = jax.random.split(key, 6)

    # Deterministic PyTorch-style uniform parameter init.
    bound1 = 1.0 / (INPUT_SIZE ** 0.5)
    bound2 = 1.0 / (HIDDEN_SIZE ** 0.5)
    w1 = jax.random.uniform(k1, (INPUT_SIZE, HIDDEN_SIZE), jnp.float32,
                            -bound1, bound1)          # linear1.weight.T
    b1 = jax.random.uniform(k2, (HIDDEN_SIZE,), jnp.float32,
                            -bound1, bound1)          # linear1.bias
    w2 = jax.random.uniform(k3, (HIDDEN_SIZE,), jnp.float32,
                            -bound2, bound2)          # linear2.weight.T (vector)
    b2 = jax.random.uniform(k4, (1,), jnp.float32,
                            -bound2, bound2)          # linear2.bias

    # Small batch (single grid step).
    batch = 8
    x = jax.random.normal(kx, (batch, INPUT_SIZE), jnp.float32)
    out = jax.block_until_ready(neural_net_forward(x, w1, b1, w2, b2))
    ref = reference_forward(x, w1, b1, w2, b2)
    assert out.shape == (batch, 1)
    assert jnp.allclose(out, ref, atol=1e-5, rtol=1e-5), \
        float(jnp.max(jnp.abs(out - ref)))

    # Larger batch: exercises the multi-tile batch grid and tail padding.
    batch2 = 2500
    x2 = jax.random.normal(kx2, (batch2, INPUT_SIZE), jnp.float32)
    out2 = jax.block_until_ready(neural_net_forward(x2, w1, b1, w2, b2))
    ref2 = reference_forward(x2, w1, b1, w2, b2)
    assert out2.shape == (batch2, 1)
    assert jnp.allclose(out2, ref2, atol=1e-5, rtol=1e-5), \
        float(jnp.max(jnp.abs(out2 - ref2)))

    print("KERNEL_OK")
</pallas_src>

<mosaic_0001>
module attributes {stable_mosaic.version = 11 : i64} {
  func.func @mlp_kernel(%arg0: i32, %arg1: memref<3x2xf32, #tpu.memory_space<smem>>, %arg2: memref<2xf32, #tpu.memory_space<smem>>, %arg3: memref<2xf32, #tpu.memory_space<smem>>, %arg4: memref<1xf32, #tpu.memory_space<smem>>, %arg5: memref<3x128xf32, #tpu.memory_space<vmem>>, %arg6: memref<1x128xf32, #tpu.memory_space<vmem>>) attributes {dimension_semantics = [#tpu.dimension_semantics<parallel>], iteration_bounds = array<i64: 1>, scalar_prefetch = 0 : i64, scratch_operands = 0 : i64, tpu.core_type = #tpu.core_type<tc>, window_params = [{transform_indices = @transform_0, window_bounds = array<i64: 3, 2>}, {transform_indices = @transform_1, window_bounds = array<i64: 2>}, {transform_indices = @transform_2, window_bounds = array<i64: 2>}, {transform_indices = @transform_3, window_bounds = array<i64: 1>}, {transform_indices = @transform_4, window_bounds = array<i64: 3, 128>}, {transform_indices = @transform_5, window_bounds = array<i64: 1, 128>}]} {
    %c0 = arith.constant 0 : index
    %c0_0 = arith.constant 0 : index
    %0 = vector.load %arg5[%c0, %c0_0] : memref<3x128xf32, #tpu.memory_space<vmem>>, vector<3x128xf32>
    %c0_1 = arith.constant 0 : index
    %1 = memref.load %arg4[%c0_1] : memref<1xf32, #tpu.memory_space<smem>>
    %2 = vector.broadcast %1 : f32 to vector<1x128xf32>
    %c0_2 = arith.constant 0 : index
    %3 = memref.load %arg2[%c0_2] : memref<2xf32, #tpu.memory_space<smem>>
    %4 = vector.broadcast %3 : f32 to vector<1x128xf32>
    %c0_3 = arith.constant 0 : index
    %c0_4 = arith.constant 0 : index
    %5 = memref.load %arg1[%c0_3, %c0_4] : memref<3x2xf32, #tpu.memory_space<smem>>
    %6 = vector.extract_strided_slice %0 {offsets = [0, 0], sizes = [1, 128], strides = [1, 1]} : vector<3x128xf32> to vector<1x128xf32>
    %7 = vector.broadcast %5 : f32 to vector<1x128xf32>
    %8 = arith.mulf %7, %6 : vector<1x128xf32>
    %9 = arith.addf %4, %8 : vector<1x128xf32>
    %c1 = arith.constant 1 : index
    %c0_5 = arith.constant 0 : index
    %10 = memref.load %arg1[%c1, %c0_5] : memref<3x2xf32, #tpu.memory_space<smem>>
    %11 = vector.extract_strided_slice %0 {offsets = [1, 0], sizes = [1, 128], strides = [1, 1]} : vector<3x128xf32> to vector<1x128xf32>
    %12 = vector.broadcast %10 : f32 to vector<1x128xf32>
    %13 = arith.mulf %12, %11 : vector<1x128xf32>
    %14 = arith.addf %9, %13 : vector<1x128xf32>
    %c2 = arith.constant 2 : index
    %c0_6 = arith.constant 0 : index
    %15 = memref.load %arg1[%c2, %c0_6] : memref<3x2xf32, #tpu.memory_space<smem>>
    %16 = vector.extract_strided_slice %0 {offsets = [2, 0], sizes = [1, 128], strides = [1, 1]} : vector<3x128xf32> to vector<1x128xf32>
    %17 = vector.broadcast %15 : f32 to vector<1x128xf32>
    %18 = arith.mulf %17, %16 : vector<1x128xf32>
    %19 = arith.addf %14, %18 : vector<1x128xf32>
    %cst = arith.constant 0.000000e+00 : f32
    %20 = vector.broadcast %cst : f32 to vector<1x128xf32>
    %21 = arith.maximumf %19, %20 : vector<1x128xf32>
    %c0_7 = arith.constant 0 : index
    %22 = memref.load %arg3[%c0_7] : memref<2xf32, #tpu.memory_space<smem>>
    %23 = vector.broadcast %22 : f32 to vector<1x128xf32>
    %24 = arith.mulf %23, %21 : vector<1x128xf32>
    %25 = arith.addf %2, %24 : vector<1x128xf32>
    %c1_8 = arith.constant 1 : index
    %26 = memref.load %arg2[%c1_8] : memref<2xf32, #tpu.memory_space<smem>>
    %27 = vector.broadcast %26 : f32 to vector<1x128xf32>
    %c0_9 = arith.constant 0 : index
    %c1_10 = arith.constant 1 : index
    %28 = memref.load %arg1[%c0_9, %c1_10] : memref<3x2xf32, #tpu.memory_space<smem>>
    %29 = vector.extract_strided_slice %0 {offsets = [0, 0], sizes = [1, 128], strides = [1, 1]} : vector<3x128xf32> to vector<1x128xf32>
    %30 = vector.broadcast %28 : f32 to vector<1x128xf32>
    %31 = arith.mulf %30, %29 : vector<1x128xf32>
    %32 = arith.addf %27, %31 : vector<1x128xf32>
    %c1_11 = arith.constant 1 : index
    %c1_12 = arith.constant 1 : index
    %33 = memref.load %arg1[%c1_11, %c1_12] : memref<3x2xf32, #tpu.memory_space<smem>>
    %34 = vector.extract_strided_slice %0 {offsets = [1, 0], sizes = [1, 128], strides = [1, 1]} : vector<3x128xf32> to vector<1x128xf32>
    %35 = vector.broadcast %33 : f32 to vector<1x128xf32>
    %36 = arith.mulf %35, %34 : vector<1x128xf32>
    %37 = arith.addf %32, %36 : vector<1x128xf32>
    %c2_13 = arith.constant 2 : index
    %c1_14 = arith.constant 1 : index
    %38 = memref.load %arg1[%c2_13, %c1_14] : memref<3x2xf32, #tpu.memory_space<smem>>
    %39 = vector.extract_strided_slice %0 {offsets = [2, 0], sizes = [1, 128], strides = [1, 1]} : vector<3x128xf32> to vector<1x128xf32>
    %40 = vector.broadcast %38 : f32 to vector<1x128xf32>
    %41 = arith.mulf %40, %39 : vector<1x128xf32>
    %42 = arith.addf %37, %41 : vector<1x128xf32>
    %cst_15 = arith.constant 0.000000e+00 : f32
    %43 = vector.broadcast %cst_15 : f32 to vector<1x128xf32>
    %44 = arith.maximumf %42, %43 : vector<1x128xf32>
    %c1_16 = arith.constant 1 : index
    %45 = memref.load %arg3[%c1_16] : memref<2xf32, #tpu.memory_space<smem>>
    %46 = vector.broadcast %45 : f32 to vector<1x128xf32>
    %47 = arith.mulf %46, %44 : vector<1x128xf32>
    %48 = arith.addf %25, %47 : vector<1x128xf32>
    %cst_17 = arith.constant 0.000000e+00 : f32
    %49 = vector.broadcast %cst_17 : f32 to vector<1x128xf32>
    %50 = arith.subf %49, %48 : vector<1x128xf32>
    %51 = math.exp %50 : vector<1x128xf32>
    %cst_18 = arith.constant 1.000000e+00 : f32
    %52 = vector.broadcast %cst_18 : f32 to vector<1x128xf32>
    %53 = arith.addf %52, %51 : vector<1x128xf32>
    %54 = tpu.reciprocal %53 {approx = true} : vector<1x128xf32> -> vector<1x128xf32>
    %55 = arith.mulf %53, %54 : vector<1x128xf32>
    %cst_19 = arith.constant 2.000000e+00 : f32
    %56 = vector.broadcast %cst_19 : f32 to vector<1x128xf32>
    %57 = arith.subf %56, %55 : vector<1x128xf32>
    %58 = arith.mulf %54, %57 : vector<1x128xf32>
    %c0_20 = arith.constant 0 : index
    %c0_21 = arith.constant 0 : index
    %59 = vector.load %arg6[%c0_20, %c0_21] : memref<1x128xf32, #tpu.memory_space<vmem>>, vector<1x128xf32>
    tpu.vector_store %arg6[%c0_20, %c0_21], %58 {strides = array<i32>} : memref<1x128xf32, #tpu.memory_space<vmem>>, vector<1x128xf32>,
    return
  }
  func.func @transform_0(%arg0: i32) -> (i32, i32) {
    %c0_i32 = arith.constant 0 : i32
    %c0_i32_0 = arith.constant 0 : i32
    %c0_i32_1 = arith.constant 0 : i32
    return %c0_i32, %c0_i32_0 : i32, i32
  }
  func.func @transform_1(%arg0: i32) -> i32 {
    %c0_i32 = arith.constant 0 : i32
    %c0_i32_0 = arith.constant 0 : i32
    return %c0_i32 : i32
  }
  func.func @transform_2(%arg0: i32) -> i32 {
    %c0_i32 = arith.constant 0 : i32
    %c0_i32_0 = arith.constant 0 : i32
    return %c0_i32 : i32
  }
  func.func @transform_3(%arg0: i32) -> i32 {
    %c0_i32 = arith.constant 0 : i32
    %c0_i32_0 = arith.constant 0 : i32
    return %c0_i32 : i32
  }
  func.func @transform_4(%arg0: i32) -> (i32, i32) {
    %c0_i32 = arith.constant 0 : i32
    %c0_i32_0 = arith.constant 0 : i32
    return %c0_i32, %arg0 : i32, i32
  }
  func.func @transform_5(%arg0: i32) -> (i32, i32) {
    %c0_i32 = arith.constant 0 : i32
    %c0_i32_0 = arith.constant 0 : i32
    return %c0_i32, %arg0 : i32, i32
  }
}

</mosaic_0001>

<bundles_post_ra>
// kernel: tpu_custom_call.1
= control target key start
LH: loop header
LB: loop body
LE: loop exit
PB: predicated region body
PF: predicated region fallthrough
CT: control target
= control target key end

     0   :  { %11 = vsyncpa [#allocation5], 0  ;;  %s274_s0 = inlined_call_operand.vmem [shape: f32[3,2], index: 0, kind: input, shape index: {}]   ;;  %s275_s1 = inlined_call_operand.vmem [shape: f32[2], index: 1, kind: input, shape index: {}]   ;;  %s276_s2 = inlined_call_operand.vmem [shape: f32[2], index: 2, kind: input, shape index: {}]   ;;  %s277_s3 = inlined_call_operand.<no memory space> [shape: f32[1], index: 3, kind: input, shape index: {}]   ;;  %s278_s4 = inlined_call_operand.vmem [shape: f32[3,128], index: 4, kind: input, shape index: {}]   ;;  %s279_s5 = inlined_call_operand.hbm [shape: f32[1,128], index: 5, kind: output, shape index: {}]  }
   0x1   :  { %12 = vsyncpa [#allocation7], 0  ;;  %s28_s20 = sshll.u32 %s275_s1, 4  ;;  %s29_s20 = int_to_ptr.vmem [resolvable:$true] %s28_s20 }
   0x2   :  { %13 = vsyncpa [#allocation4], 0  ;;  %s19_s23 = sshll.u32 %s274_s0, 4  ;;  %s219_s24 = smov [#allocation6]   ;;  %s20_s23 = int_to_ptr.vmem [resolvable:$true] %s19_s23 }
   0x3   :  { %31 = dma.vmem_to_smem %s29_s20, 16, %s219_s24, [#allocation7]  }
   0x4   :  { %s220_s25 = smov [#allocation3]   ;;  %s37_s28 = sshll.u32 %s276_s2, 4  ;;  %s38_s28 = int_to_ptr.vmem [resolvable:$true] %s37_s28 }
   0x5   :  { %22 = dma.vmem_to_smem %s20_s23, 64, %s220_s25, [#allocation5]  }
   0x6   :  { %s221_s29 = smov [#allocation8]  }
   0x7   :  { %40 = dma.vmem_to_smem %s38_s28, 16, %s221_s29, [#allocation7]  }
   0x8   :  { %213 = dma.done.wait [#allocation5], 64  }
   0x9   :  { %214 = vsyncadd [#allocation5], 4294967232 }
   0xa   :  { %215 = dma.done.wait [#allocation7], 32  }
   0xb   :  { %216 = vsyncadd [#allocation7], 4294967264 }
   0xc   :  { %57 = sfence }
   0xd   :  { %s61_s1 = sld [smem:[#allocation6]]  ;;  %v58_v0 = vld [vmem:[%s278_s4] sm:$0x7]  ;;  %v60_v26 = vstv %s277_s3  ;;  %s222_s15 = smov [#allocation9]  }
   0xe   :  { %s63_s30 = sld [smem:[#allocation3]]  ;;  %s125_s16 = sshll.u32 %s222_s15, 4  ;;  %s126_s16 = int_to_ptr.vmem [resolvable:$true] %s125_s16 }
   0xf   :  { %s138_s0 = sld [smem:[#allocation3 + $0x80]]  ;;  %s127_s3 = sshll.u32 %s279_s5, 4  ;;  %s128_s3 = int_to_ptr.hbm [resolvable:$true] %s127_s3 }
  0x10   :  { %s139_s6 = sld [smem:[#allocation3 + $0x100]] }
  0x11   :  { %s262_s7 = sld [smem:[#allocation8]] }
  0x12   :  { %s140_s10 = sld [smem:[#allocation6 + $0x1]] }
  0x13   :  { %s141_s2 = sld [smem:[#allocation3 + $0x1]]  ;;  %v62_v1 = vstv %s61_s1 }
  0x14   :  { %v64_v2 = vstv %s63_s30  ;;  %s142_s11 = sld [smem:[#allocation3 + $0x81]] }
  0x15   :  { %v65_v3 = vmul.f32 %v64_v2, %v58_v0  ;;  %v68_v4 = vstv %s138_s0  ;;  %s143_s12 = sld [smem:[#allocation3 + $0x101]] }
  0x16   :  { %v69_v5 = vmul.f32 %v68_v4, %v58_v0  ;;  %v75_v6 = vstv %s139_s6  ;;  %s144_s4 = sld [smem:[#allocation8 + $0x1]] }
  0x17   :  { %v66_v7 = vadd.f32 %v65_v3, %v62_v1  ;;  %v76_v8 = vmul.f32 %v75_v6, %v58_v0  ;;  %v83_v21 = vstv %s262_s7 }
  0x18   :  { %v71_v9 = vrot.slane %v69_v5, 1  ;;  %v87_v11 = vstv %s140_s10 }
  0x19   :  { %v78_v10 = vrot.slane %v76_v8, 2  ;;  %v89_v12 = vstv %s141_s2 }
  0x1a   :  { %v73_v13 = vadd.f32 %v71_v9, %v66_v7  ;;  %v90_v14 = vmul.f32 %v89_v12, %v58_v0  ;;  %v93_v15 = vstv %s142_s11 }
  0x1b   :  { %v94_v16 = vmul.f32 %v93_v15, %v58_v0  ;;  %v100_v17 = vstv %s143_s12 }
  0x1c   :  { %v80_v18 = vadd.f32 %v78_v10, %v73_v13  ;;  %v91_v19 = vadd.f32 %v90_v14, %v87_v11  ;;  %v101_v20 = vmul.f32 %v100_v17, %v58_v0  ;;  %v108_v29 = vstv %s144_s4 }
  0x1d   :  { %v96_v22 = vrot.slane %v94_v16, 1 }
  0x1e   :  { %v81_v23 = vmax.f32 %v80_v18, 0.0  ;;  %v103_v24 = vrot.slane %v101_v20, 2 }
  0x1f   :  { %v98_v25 = vadd.f32 %v96_v22, %v91_v19 }
  0x20   :  { %v84_v27 = vmul.f32 %v83_v21, %v81_v23 }
  0x21   :  { %v105_v28 = vadd.f32 %v103_v24, %v98_v25 }
  0x22   :  { %v85_v30 = vadd.f32 %v84_v27, %v60_v26 }
  0x23   :  { %v106_v31 = vmax.f32 %v105_v28, 0.0 }
  0x25   :  { %v109_v32 = vmul.f32 %v108_v29, %v106_v31 }
  0x27   :  { %v110_v33 = vadd.f32 %v109_v32, %v85_v30 }
  0x29   :  { %v111_v34 = vsub.f32 0.0, %v110_v33 }
  0x2b   :  { %v112_v35 = vmul.f32 1.442695, %v111_v34 }
  0x2d   :  { %149 = vpow2.f32 %v112_v35 }
  0x33   :  { %v150_v36 = vpop.eup %149 }
  0x34   :  { %v114_v37 = vadd.f32 1.0, %v150_v36 }
  0x36   :  { %151 = vrcp.f32 %v114_v37 }
  0x3c   :  { %v152_v38 = vpop.eup %151 }
  0x3d   :  { %v116_v39 = vmul.f32 %v152_v38, %v114_v37 }
  0x3f   :  { %v117_v40 = vsub.f32 2.0, %v116_v39 }
  0x41   :  { %v118_v41 = vmul.f32 %v152_v38, %v117_v40 }
  0x43   :  { %119 = vst [vmem:[#allocation9] sm:$0x1] %v118_v41 }
  0x44   :  { %130 = dma.vmem_to_hbm [thread:$0]  %s126_s16, 16, %s128_s3, [#allocation4]  }
  0x45   :  { %217 = dma.done.wait [#allocation4], 16  }
  0x46   :  { %218 = vsyncadd [#allocation4], 4294967280 }
  0x47   :  { %135 = vsyncpa [#allocation4], 1 }
  0x48   :  { %136 = vsyncpa [#allocation5], 1 }
  0x49   :  { %137 = vsyncpa [#allocation7], 1 }

</bundles_post_ra>
